<compile_context>
chip_gen: v6e
topology: v6e:2x2x1
jax: 0.10.0
libtpu: 0.0.40
codegen_flags: <defaults>
</compile_context>

<pallas_src>
import functools

import jax
import jax.numpy as jnp
from jax import lax
from jax.experimental import pallas as pl
from jax.experimental.pallas import tpu as pltpu


# ----------------------------- Focal loss kernel -----------------------------

def _focal_kernel(pred_ref, gt_ref, out_ref):
    pred = pred_ref[...].astype(jnp.float32)
    gt = gt_ref[...].astype(jnp.float32)

    eps = jnp.float32(1e-12)
    pred = jnp.clip(pred, eps, 1.0 - eps)   # avoid 0*log(0) -> NaN

    pos = (gt == 1.0).astype(jnp.float32)
    neg = (gt < 1.0).astype(jnp.float32)
    neg_w = (1.0 - gt) ** 4

    pos_loss = jnp.log(pred) * (1.0 - pred) ** 2 * pos
    neg_loss = jnp.log(1.0 - pred) * pred * pred * neg_w * neg

    pos_s = jnp.sum(pos_loss)
    neg_s = jnp.sum(neg_loss)
    num_p = jnp.sum(pos)

    lane = lax.broadcasted_iota(jnp.int32, (1, 128), 1)
    out_ref[...] = (jnp.where(lane == 0, pos_s, 0.0)
                    + jnp.where(lane == 1, neg_s, 0.0)
                    + jnp.where(lane == 2, num_p, 0.0))


def focal_loss(pred, gt, *, lane_width=1024, max_rows=256):
    total = int(pred.size)
    p = pred.reshape(-1)
    g = gt.reshape(-1)

    L = lane_width
    rows = -(-total // L)                       # ceil
    tr = min(max_rows, rows)
    rows_pad = -(-rows // tr) * tr
    pad = rows_pad * L - total
    # padding: pred=0.5 (log-safe), gt=2.0 -> both pos and neg masks are zero.
    p = jnp.pad(p, (0, pad), constant_values=jnp.asarray(0.5, p.dtype)).reshape(rows_pad, L)
    g = jnp.pad(g, (0, pad), constant_values=jnp.asarray(2.0, g.dtype)).reshape(rows_pad, L)
    grid = rows_pad // tr

    parts = pl.pallas_call(
        _focal_kernel,
        out_shape=jax.ShapeDtypeStruct((grid, 128), jnp.float32),
        grid=(grid,),
        in_specs=[pl.BlockSpec((tr, L), lambda i: (i, 0)),
                  pl.BlockSpec((tr, L), lambda i: (i, 0))],
        out_specs=pl.BlockSpec((1, 128), lambda i: (i, 0)),
        compiler_params=pltpu.CompilerParams(
            dimension_semantics=("parallel",),
            vmem_limit_bytes=32 * 1024 * 1024),
    )(p, g)

    pos_s = jnp.sum(parts[:, 0])
    neg_s = jnp.sum(parts[:, 1])
    num_pos = jnp.sum(parts[:, 2])
    return jnp.where(num_pos == 0.0,
                     -neg_s,
                     -(pos_s + neg_s) / jnp.maximum(num_pos, 1.0))


# ------------------- Fused gathered SmoothL1 / BCE kernel --------------------

def _fused_gather_kernel(*refs, loss_types):
    n = len(loss_types)
    ind_ref, mask_ref = refs[0], refs[1]
    feat_refs = refs[2:2 + n]
    tgt_refs = refs[2 + n:2 + 2 * n]
    out_ref = refs[2 + 2 * n]

    K = ind_ref.shape[1]
    HW = feat_refs[0].shape[-1]

    ind = ind_ref[0]                             # (K, 1) int32
    mask = mask_ref[0].astype(jnp.float32)       # (K, 1)

    # One-hot gather matrix shared by every head.  Rows with out-of-range
    # indices are all-zero, so padded entries never touch invalid memory.
    # TODO(synk): for very large K, chunk the one-hot over K to bound VMEM.
    hw_iota = lax.broadcasted_iota(jnp.int32, (K, HW), 1)
    onehot = (hw_iota == ind).astype(jnp.float32)            # (K, HW)

    def gathered(feat_ref):
        feat = feat_ref[0].astype(jnp.float32)                # (D, HW)
        return lax.dot_general(                               # (K, D)
            onehot, feat, (((1,), (1,)), ((), ())),
            precision=lax.Precision.HIGHEST,
            preferred_element_type=jnp.float32)

    sums = []
    for lt, fr, tr in zip(loss_types, feat_refs, tgt_refs):
        p = gathered(fr)                                      # (K, D)
        t = tr[0].astype(jnp.float32)                         # (K, D)
        if lt == "smooth_l1":
            d = jnp.abs(p - t)
            l = jnp.where(d < 1.0, 0.5 * d * d, d - 0.5)
        else:  # binary cross entropy (log clamped at -100, like torch)
            logp = jnp.maximum(jnp.log(p), -100.0)
            log1mp = jnp.maximum(jnp.log(1.0 - p), -100.0)
            l = -(t * logp + (1.0 - t) * log1mp)
        sums.append(jnp.sum(l * mask))
    sums.append(jnp.sum(mask))                                # mask count

    lane = lax.broadcasted_iota(jnp.int32, (1, 128), 1)
    acc = jnp.zeros((1, 128), jnp.float32)
    for i, s in enumerate(sums):
        acc = acc + jnp.where(lane == i, s, 0.0)
    out_ref[...] = acc


def fused_gather_losses(pr_decs, gt_batch, heads):
    """heads: list of (pred_key, target_key, loss_type). Returns list of scalar losses."""
    B, K = gt_batch['ind'].shape
    ind = gt_batch['ind'].astype(jnp.int32).reshape(B, K, 1)
    mask = gt_batch['reg_mask'].astype(jnp.float32).reshape(B, K, 1)

    feats, tgts, dims, loss_types = [], [], [], []
    hw_ref = None
    for pk, tk, lt in heads:
        o = pr_decs[pk]
        _, D, H, W = o.shape
        hw = H * W
        if hw_ref is None:
            hw_ref = hw
        assert hw == hw_ref, "all gather heads must share spatial size"
        feats.append(o.reshape(B, D, hw))        # free reshape, NCHW kept
        tgts.append(gt_batch[tk])                # (B, K, D)
        dims.append(D)
        loss_types.append(lt)
    HW = hw_ref

    in_specs = [pl.BlockSpec((1, K, 1), lambda b: (b, 0, 0)),
                pl.BlockSpec((1, K, 1), lambda b: (b, 0, 0))]
    for D in dims:
        in_specs.append(pl.BlockSpec((1, D, HW), lambda b: (b, 0, 0)))
    for D in dims:
        in_specs.append(pl.BlockSpec((1, K, D), lambda b: (b, 0, 0)))

    kernel = functools.partial(_fused_gather_kernel, loss_types=tuple(loss_types))
    parts = pl.pallas_call(
        kernel,
        out_shape=jax.ShapeDtypeStruct((B, 128), jnp.float32),
        grid=(B,),
        in_specs=in_specs,
        out_specs=pl.BlockSpec((1, 128), lambda b: (b, 0)),
        compiler_params=pltpu.CompilerParams(
            dimension_semantics=("parallel",),
            vmem_limit_bytes=32 * 1024 * 1024),
    )(ind, mask, *feats, *tgts)

    sums = jnp.sum(parts, axis=0)                # (128,)
    msum = sums[len(heads)]
    losses = []
    for i, D in enumerate(dims):
        denom = jnp.maximum(msum * jnp.float32(D), 1.0)
        losses.append(jnp.where(msum > 0.0, sums[i] / denom, 0.0))
    return losses


# --------------------------------- LossAll -----------------------------------

def loss_all(pr_decs, gt_batch):
    hm_loss = focal_loss(pr_decs['hm'], gt_batch['hm'])

    heads = [('wh', 'wh', 'smooth_l1'), ('reg', 'reg', 'smooth_l1')]
    has_corners = 'corners' in pr_decs
    if has_corners:
        heads.append(('corners', 'corners', 'smooth_l1'))
    heads.append(('cls_theta', 'cls_theta', 'bce'))

    losses = fused_gather_losses(pr_decs, gt_batch, heads)
    wh_loss, off_loss = losses[0], losses[1]
    corners_loss = losses[2] if has_corners else 0.0
    cls_theta_loss = losses[-1]

    # TODO(synk): the PyTorch isnan() debug-print branch is host-side logging only.
    return hm_loss + wh_loss + off_loss + cls_theta_loss + corners_loss


# ------------------------- Pure-JAX reference (check) -------------------------

def _ref_focal(pred, gt):
    pos = (gt == 1.0).astype(jnp.float32)
    neg = (gt < 1.0).astype(jnp.float32)
    neg_w = (1.0 - gt) ** 4
    pos_loss = jnp.sum(jnp.log(pred) * (1.0 - pred) ** 2 * pos)
    neg_loss = jnp.sum(jnp.log(1.0 - pred) * pred ** 2 * neg_w * neg)
    num_pos = jnp.sum(pos)
    return jnp.where(num_pos == 0.0, -neg_loss,
                     -(pos_loss + neg_loss) / jnp.maximum(num_pos, 1.0))


def _ref_gather(output, mask, ind, target, loss_type):
    B, D, H, W = output.shape
    feat = jnp.transpose(output, (0, 2, 3, 1)).reshape(B, H * W, D)
    pred = jnp.take_along_axis(feat, ind[:, :, None].astype(jnp.int32), axis=1)
    if loss_type == "smooth_l1":
        diff = jnp.abs(pred - target)
        l = jnp.where(diff < 1.0, 0.5 * diff * diff, diff - 0.5)
    else:
        l = -(target * jnp.maximum(jnp.log(pred), -100.0)
              + (1.0 - target) * jnp.maximum(jnp.log(1.0 - pred), -100.0))
    m = mask.astype(jnp.float32)
    msum = jnp.sum(m)
    return jnp.where(msum > 0.0,
                     jnp.sum(l * m[:, :, None]) / jnp.maximum(msum * D, 1.0),
                     0.0)


def _ref_loss_all(pr, gt):
    return (_ref_focal(pr['hm'], gt['hm'])
            + _ref_gather(pr['wh'], gt['reg_mask'], gt['ind'], gt['wh'], "smooth_l1")
            + _ref_gather(pr['reg'], gt['reg_mask'], gt['ind'], gt['reg'], "smooth_l1")
            + _ref_gather(pr['corners'], gt['reg_mask'], gt['ind'], gt['corners'], "smooth_l1")
            + _ref_gather(pr['cls_theta'], gt['reg_mask'], gt['ind'], gt['cls_theta'], "bce"))


# ----------------------------------- main -------------------------------------

if __name__ == "__main__":
    key = jax.random.PRNGKey(0)
    B, C, H, W, K = 2, 4, 16, 16, 8
    D_wh, D_reg, D_corners, D_theta = 10, 2, 8, 1
    ks = jax.random.split(key, 12)
    sig = jax.nn.sigmoid

    pr_decs = {
        'hm': sig(jax.random.normal(ks[0], (B, C, H, W), jnp.float32)),
        'wh': jax.random.normal(ks[1], (B, D_wh, H, W), jnp.float32),
        'reg': jax.random.normal(ks[2], (B, D_reg, H, W), jnp.float32),
        'corners': jax.random.normal(ks[3], (B, D_corners, H, W), jnp.float32),
        'cls_theta': sig(jax.random.normal(ks[4], (B, D_theta, H, W), jnp.float32)),
    }

    gt_hm = jax.random.uniform(ks[5], (B, C, H, W), jnp.float32, 0.0, 0.95)
    gt_hm = gt_hm.at[:, :, 4, 7].set(1.0)  # exact-1 peaks like a gaussian heatmap

    ind = jax.random.randint(ks[6], (B, K), 0, H * W).astype(jnp.int32)
    reg_mask = (jax.random.uniform(ks[7], (B, K)) > 0.3).astype(jnp.float32)
    reg_mask = reg_mask.at[:, 0].set(1.0)  # at least one valid object per batch

    gt_batch = {
        'hm': gt_hm,
        'reg_mask': reg_mask,
        'ind': ind,
        'wh': jax.random.normal(ks[8], (B, K, D_wh), jnp.float32),
        'reg': jax.random.uniform(ks[9], (B, K, D_reg), jnp.float32),
        'corners': jax.random.normal(ks[10], (B, K, D_corners), jnp.float32),
        'cls_theta': (jax.random.uniform(ks[11], (B, K, D_theta)) > 0.5).astype(jnp.float32),
    }

    loss = loss_all(pr_decs, gt_batch)
    jax.block_until_ready(loss)

    ref = _ref_loss_all(pr_decs, gt_batch)
    assert jnp.isfinite(loss), loss
    assert jnp.allclose(loss, ref, rtol=1e-4, atol=1e-4), (loss, ref)

    print("KERNEL_OK")
</pallas_src>

<mosaic_0001>
module attributes {stable_mosaic.version = 11 : i64} {
  func.func @_focal_kernel(%arg0: i32, %arg1: memref<2x1024xf32, #tpu.memory_space<vmem>>, %arg2: memref<2x1024xf32, #tpu.memory_space<vmem>>, %arg3: memref<1x128xf32, #tpu.memory_space<vmem>>) attributes {dimension_semantics = [#tpu.dimension_semantics<parallel>], iteration_bounds = array<i64: 1>, scalar_prefetch = 0 : i64, scratch_operands = 0 : i64, tpu.core_type = #tpu.core_type<tc>, window_params = [{transform_indices = @transform_0, window_bounds = array<i64: 2, 1024>}, {transform_indices = @transform_1, window_bounds = array<i64: 2, 1024>}, {transform_indices = @transform_2, window_bounds = array<i64: 1, 128>}]} {
    %c0 = arith.constant 0 : index
    %c0_0 = arith.constant 0 : index
    %0 = vector.load %arg1[%c0, %c0_0] : memref<2x1024xf32, #tpu.memory_space<vmem>>, vector<2x1024xf32>
    %c0_1 = arith.constant 0 : index
    %c0_2 = arith.constant 0 : index
    %1 = vector.load %arg2[%c0_1, %c0_2] : memref<2x1024xf32, #tpu.memory_space<vmem>>, vector<2x1024xf32>
    %cst = arith.constant 1.000000e+00 : f32
    %cst_3 = arith.constant 9.99999996E-13 : f32
    %2 = arith.subf %cst, %cst_3 : f32
    %cst_4 = arith.constant 9.99999996E-13 : f32
    %3 = vector.broadcast %cst_4 : f32 to vector<2x1024xf32>
    %4 = arith.maximumf %3, %0 : vector<2x1024xf32>
    %5 = vector.broadcast %2 : f32 to vector<2x1024xf32>
    %6 = arith.minimumf %5, %4 : vector<2x1024xf32>
    %cst_5 = arith.constant 1.000000e+00 : f32
    %7 = vector.broadcast %cst_5 : f32 to vector<2x1024xf32>
    %8 = arith.cmpf oeq, %1, %7 : vector<2x1024xf32>
    %9 = arith.extui %8 : vector<2x1024xi1> to vector<2x1024xi32>
    %10 = arith.sitofp %9 : vector<2x1024xi32> to vector<2x1024xf32>
    %cst_6 = arith.constant 1.000000e+00 : f32
    %11 = vector.broadcast %cst_6 : f32 to vector<2x1024xf32>
    %12 = arith.cmpf olt, %1, %11 : vector<2x1024xf32>
    %13 = arith.extui %12 : vector<2x1024xi1> to vector<2x1024xi32>
    %14 = arith.sitofp %13 : vector<2x1024xi32> to vector<2x1024xf32>
    %cst_7 = arith.constant 1.000000e+00 : f32
    %15 = vector.broadcast %cst_7 : f32 to vector<2x1024xf32>
    %16 = arith.subf %15, %1 : vector<2x1024xf32>
    %17 = arith.mulf %16, %16 : vector<2x1024xf32>
    %18 = arith.mulf %17, %17 : vector<2x1024xf32>
    %19 = math.log %6 : vector<2x1024xf32>
    %cst_8 = arith.constant 1.000000e+00 : f32
    %20 = vector.broadcast %cst_8 : f32 to vector<2x1024xf32>
    %21 = arith.subf %20, %6 : vector<2x1024xf32>
    %22 = arith.mulf %21, %21 : vector<2x1024xf32>
    %23 = arith.mulf %19, %22 : vector<2x1024xf32>
    %24 = arith.mulf %23, %10 : vector<2x1024xf32>
    %cst_9 = arith.constant 1.000000e+00 : f32
    %25 = vector.broadcast %cst_9 : f32 to vector<2x1024xf32>
    %26 = arith.subf %25, %6 : vector<2x1024xf32>
    %27 = math.log %26 : vector<2x1024xf32>
    %28 = arith.mulf %27, %6 : vector<2x1024xf32>
    %29 = arith.mulf %28, %6 : vector<2x1024xf32>
    %30 = arith.mulf %29, %18 : vector<2x1024xf32>
    %31 = arith.mulf %30, %14 : vector<2x1024xf32>
    %32 = vector.shape_cast %24 : vector<2x1024xf32> to vector<1x2x1024xf32>
    %cst_10 = arith.constant dense<0.000000e+00> : vector<1xf32>
    %33 = vector.multi_reduction <add>, %32, %cst_10 [1, 2] : vector<1x2x1024xf32> to vector<1xf32>
    %34 = vector.shape_cast %33 : vector<1xf32> to vector<1x1x1xf32>
    %35 = vector.extract %34[0, 0, 0] : f32 from vector<1x1x1xf32>
    %36 = vector.shape_cast %31 : vector<2x1024xf32> to vector<1x2x1024xf32>
    %cst_11 = arith.constant dense<0.000000e+00> : vector<1xf32>
    %37 = vector.multi_reduction <add>, %36, %cst_11 [1, 2] : vector<1x2x1024xf32> to vector<1xf32>
    %38 = vector.shape_cast %37 : vector<1xf32> to vector<1x1x1xf32>
    %39 = vector.extract %38[0, 0, 0] : f32 from vector<1x1x1xf32>
    %40 = vector.shape_cast %10 : vector<2x1024xf32> to vector<1x2x1024xf32>
    %cst_12 = arith.constant dense<0.000000e+00> : vector<1xf32>
    %41 = vector.multi_reduction <add>, %40, %cst_12 [1, 2] : vector<1x2x1024xf32> to vector<1xf32>
    %42 = vector.shape_cast %41 : vector<1xf32> to vector<1x1x1xf32>
    %43 = vector.extract %42[0, 0, 0] : f32 from vector<1x1x1xf32>
    %44 = tpu.iota {dimensions = array<i32: 1>} : vector<1x128xi32>
    %c0_i32 = arith.constant 0 : i32
    %45 = vector.broadcast %c0_i32 : i32 to vector<1x128xi32>
    %46 = arith.cmpi eq, %44, %45 : vector<1x128xi32>
    %cst_13 = arith.constant 0.000000e+00 : f32
    %47 = vector.broadcast %35 : f32 to vector<1x128xf32>
    %48 = vector.broadcast %cst_13 : f32 to vector<1x128xf32>
    %49 = arith.select %46, %47, %48 : vector<1x128xi1>, vector<1x128xf32>
    %c1_i32 = arith.constant 1 : i32
    %50 = vector.broadcast %c1_i32 : i32 to vector<1x128xi32>
    %51 = arith.cmpi eq, %44, %50 : vector<1x128xi32>
    %cst_14 = arith.constant 0.000000e+00 : f32
    %52 = vector.broadcast %39 : f32 to vector<1x128xf32>
    %53 = vector.broadcast %cst_14 : f32 to vector<1x128xf32>
    %54 = arith.select %51, %52, %53 : vector<1x128xi1>, vector<1x128xf32>
    %55 = arith.addf %49, %54 : vector<1x128xf32>
    %c2_i32 = arith.constant 2 : i32
    %56 = vector.broadcast %c2_i32 : i32 to vector<1x128xi32>
    %57 = arith.cmpi eq, %44, %56 : vector<1x128xi32>
    %cst_15 = arith.constant 0.000000e+00 : f32
    %58 = vector.broadcast %43 : f32 to vector<1x128xf32>
    %59 = vector.broadcast %cst_15 : f32 to vector<1x128xf32>
    %60 = arith.select %57, %58, %59 : vector<1x128xi1>, vector<1x128xf32>
    %61 = arith.addf %55, %60 : vector<1x128xf32>
    %c0_16 = arith.constant 0 : index
    %c0_17 = arith.constant 0 : index
    %62 = vector.load %arg3[%c0_16, %c0_17] : memref<1x128xf32, #tpu.memory_space<vmem>>, vector<1x128xf32>
    tpu.vector_store %arg3[%c0_16, %c0_17], %61 {strides = array<i32>} : memref<1x128xf32, #tpu.memory_space<vmem>>, vector<1x128xf32>,
    return
  }
  func.func @transform_0(%arg0: i32) -> (i32, i32) {
    %c0_i32 = arith.constant 0 : i32
    %c0_i32_0 = arith.constant 0 : i32
    return %arg0, %c0_i32 : i32, i32
  }
  func.func @transform_1(%arg0: i32) -> (i32, i32) {
    %c0_i32 = arith.constant 0 : i32
    %c0_i32_0 = arith.constant 0 : i32
    return %arg0, %c0_i32 : i32, i32
  }
  func.func @transform_2(%arg0: i32) -> (i32, i32) {
    %c0_i32 = arith.constant 0 : i32
    %c0_i32_0 = arith.constant 0 : i32
    return %arg0, %c0_i32 : i32, i32
  }
}

</mosaic_0001>

<bundles_post_ra>
// kernel: tpu_custom_call.1
= control target key start
LH: loop header
LB: loop body
LE: loop exit
PB: predicated region body
PF: predicated region fallthrough
CT: control target
= control target key end

     0   :  { %7 = vsyncpa [#allocation3], 0  ;;  %s505_s0 = inlined_call_operand.hbm [shape: f32[2,1024], index: 0, kind: input, shape index: {}]   ;;  %s506_s1 = inlined_call_operand.hbm [shape: f32[2,1024], index: 1, kind: input, shape index: {}]   ;;  %s507_s2 = inlined_call_operand.hbm [shape: f32[1,128], index: 2, kind: output, shape index: {}]  }
   0x1   :  { %8 = vsyncpa [#allocation6], 0 }
   0x2   :  { %9 = vsyncpa [#allocation4], 0  ;;  %s410_s9 = smov [#allocation2]   ;;  %s411_s11 = smov [#allocation5]  }
   0x3   :  { %s16_s10 = sshll.u32 %s410_s9, 4  ;;  %s26_s12 = sshll.u32 %s411_s11, 4  ;;  %s17_s10 = int_to_ptr.vmem [resolvable:$true] %s16_s10  ;;  %s27_s12 = int_to_ptr.vmem [resolvable:$true] %s26_s12 }
   0x4   :  { %s352_s13 = scalar_lea.vmem %s17_s10, 256  ;;  %p357_p1 = scmp.lt.s32.totalorder %s17_s10, %s17_s10 }
   0x5   :  { %p353_p0 = scmp.ne.s32.totalorder %s17_s10, %s352_s13  ;;  %p358_p2 = scmp.lt.s32.totalorder %s352_s13, %s352_s13 }
   0x7   :  { %p359_p3 = por %p358_p2, %p357_p1 }
   0x9   :  { %p360_p4 = pnand %p359_p3, %p353_p0 }
   0xb   :  { %363 = shalt.err (!%p360_p4)
}
   0xc   :  { %19 = dma.hbm_to_vmem [thread:$0]  %s505_s0, 256, %s17_s10, [#allocation3]  }
   0xd   :  { %s372_s16 = scalar_lea.vmem %s27_s12, 256  ;;  %p377_p6 = scmp.lt.s32.totalorder %s27_s12, %s27_s12 }
   0xe   :  { %p373_p5 = scmp.ne.s32.totalorder %s27_s12, %s372_s16  ;;  %p378_p7 = scmp.lt.s32.totalorder %s372_s16, %s372_s16 }
  0x10   :  { %p379_p8 = por %p378_p7, %p377_p6 }
  0x12   :  { %p380_p9 = pnand %p379_p8, %p373_p5 }
  0x14   :  { %383 = shalt.err (!%p380_p9)
}
  0x15   :  { %29 = dma.hbm_to_vmem [thread:$0]  %s506_s1, 256, %s27_s12, [#allocation6]  }
  0x16   :  { %404 = dma.done.wait [#allocation3], 256  }
  0x17   :  { %405 = vsyncadd [#allocation3], 4294967040 }
  0x18   :  { %406 = dma.done.wait [#allocation6], 256  }
  0x19   :  { %407 = vsyncadd [#allocation6], 4294967040  ;;  %v412_v0 = vmov 1983009808   ;;  %v92_v2 = vlaneseq  ;;  %v36_v5 = vld [vmem:[#allocation2] sm:$0xff]  ;;  %v37_v6 = vld [vmem:[#allocation2 + $0x8] sm:$0xff] }
  0x1a   :  { %v90_v1 = vunpack.c.l.s4 %v412_v0  ;;  %v437_v7 = vld [vmem:[#allocation5] sm:$0xff]  ;;  %v439_v8 = vld [vmem:[#allocation5 + $0x8] sm:$0xff]  ;;  %v40_v9 = vmax.f32 %v36_v5, 1e-12  ;;  %v41_v10 = vmax.f32 %v37_v6, 1e-12 }
  0x1b   :  { %v93_v4 = vshrl.u32 %v92_v2, 7  ;;  %vm44_vm0 = vcmp.eq.f32.partialorder %v437_v7, 1.0  ;;  %vm45_vm1 = vcmp.eq.f32.partialorder %v439_v8, 1.0  ;;  %v413_v14 = vmov 0.0   ;;  %s414_s20 = smov [#allocation7]  }
  0x1c   :  { %v91_v3 = vunpack.c.0.s8 %v90_v1  ;;  %v444_v12 = vmin.f32 %v40_v9, 1.0  ;;  %v446_v13 = vmin.f32 %v41_v10, 1.0  ;;  %v321_v15 = vsel %vm44_vm0, 1.0, %v413_v14  ;;  %s311_s21 = sshll.u32 %s414_s20, 4  ;;  %s312_s21 = int_to_ptr.vmem [resolvable:$true] %s311_s21 }
  0x1d   :  { %v225_v16 = vcombine.high %v321_v15, %v321_v15  ;;  %v322_v20 = vsel %vm45_vm1, 1.0, %v413_v14  ;;  %vm130_vm2 = vcmask 1041408   ;;  %v56_v38 = vsub.f32 1.0, %v437_v7  ;;  %s384_s22 = scalar_lea.vmem %s312_s21, 16  ;;  %s388_s23 = scalar_lea.vmem %s312_s21, 32 }
  0x1e   :  { %v442_v11 = vsub.s32 %v91_v3, %v93_v4  ;;  %336 = vlog2.f32 %v444_v12  ;;  %v66_v18 = vsub.f32 1.0, %v444_v12  ;;  %v67_v19 = vsub.f32 1.0, %v446_v13  ;;  %p385_p10 = scmp.ne.s32.totalorder %s312_s21, %s384_s22  ;;  %p389_p11 = scmp.lt.s32.totalorder %s312_s21, %s312_s21 }
  0x1f   :  { %338 = vlog2.f32 %v446_v13  ;;  %v242_v23 = vcombine.high %v322_v20, %v322_v20  ;;  %v57_v40 = vsub.f32 1.0, %v439_v8  ;;  %v58_v49 = vmul.f32 %v56_v38, %v56_v38  ;;  %p390_p12 = scmp.lt.s32.totalorder %s388_s23, %s384_s22 }
  0x20   :  { %v232_v17 = vrot.slane %v321_v15, %v442_v11  ;;  %v239_v21 = vrot.slane %v225_v16, %v442_v11  ;;  %340 = vlog2.f32 %v66_v18  ;;  %v249_v24 = vrot.slane %v322_v20, %v442_v11 }
  0x21   :  { %342 = vlog2.f32 %v67_v19  ;;  %v256_v30 = vrot.slane %v242_v23, %v442_v11  ;;  %v68_v41 = vmul.f32 %v66_v18, %v66_v18  ;;  %v69_v44 = vmul.f32 %v67_v19, %v67_v19  ;;  %p391_p13 = por %p390_p12, %p389_p11 }
  0x22   :  { %v240_v22 = vcombine.high %v232_v17, %v232_v17  ;;  %v241_v25 = vcombine.high %v239_v21, %v239_v21  ;;  %v267_v26 = vsel %vm130_vm2, %v232_v17, 0.0  ;;  %v270_v28 = vsel %vm130_vm2, %v239_v21, 0.0 }
  0x23   :  { %v257_v31 = vcombine.high %v249_v24, %v249_v24  ;;  %v274_v34 = vsel %vm130_vm2, %v249_v24, 0.0  ;;  %v258_v36 = vcombine.high %v256_v30, %v256_v30  ;;  %v278_v42 = vsel %vm130_vm2, %v256_v30, 0.0  ;;  %p392_p0 = pnand %p391_p13, %p385_p10 }
  0x24   :  { %v268_v27 = vsel %vm130_vm2, %v240_v22, 0.0  ;;  %v272_v32 = vsel %vm130_vm2, %v241_v25, 0.0  ;;  %v59_v53 = vmul.f32 %v57_v40, %v57_v40  ;;  %vm50_vm3 = vcmp.lt.f32.partialorder %v437_v7, 1.0 }
  0x25   :  { %v269_v29 = vadd.f32 %v268_v27, %v267_v26  ;;  %v276_v37 = vsel %vm130_vm2, %v257_v31, 0.0  ;;  %v280_v48 = vsel %vm130_vm2, %v258_v36, 0.0  ;;  %v60_v61 = vmul.f32 %v58_v49, %v58_v49 }
  0x26   :  { %v61_v0 = vmul.f32 %v59_v53, %v59_v53  ;;  %vm51_vm4 = vcmp.lt.f32.partialorder %v439_v8, 1.0  ;;  %v323_v6 = vsel %vm50_vm3, 1.0, %v413_v14 }
  0x27   :  { %v271_v33 = vadd.f32 %v270_v28, %v269_v29  ;;  %v324_v19 = vsel %vm51_vm4, 1.0, %v413_v14 }
  0x29   :  { %v273_v35 = vadd.f32 %v272_v32, %v271_v33 }
  0x2b   :  { %v275_v39 = vadd.f32 %v274_v34, %v273_v35  ;;  %v337_v43 = vpop.eup %336 }
  0x2c   :  { %v339_v46 = vpop.eup %338  ;;  %v63_v47 = vmul.f32 0.6931472, %v337_v43 }
  0x2d   :  { %v277_v45 = vadd.f32 %v276_v37, %v275_v39  ;;  %v341_v50 = vpop.eup %340  ;;  %v65_v51 = vmul.f32 0.6931472, %v339_v46 }
  0x2e   :  { %v343_v54 = vpop.eup %342  ;;  %v70_v55 = vmul.f32 %v68_v41, %v63_v47  ;;  %v75_v56 = vmul.f32 0.6931472, %v341_v50 }
  0x2f   :  { %v279_v52 = vadd.f32 %v278_v42, %v277_v45  ;;  %v71_v57 = vmul.f32 %v69_v44, %v65_v51  ;;  %v77_v59 = vmul.f32 0.6931472, %v343_v54 }
  0x30   :  { %v72_v60 = vmul.f32 %v321_v15, %v70_v55  ;;  %v78_v62 = vmul.f32 %v75_v56, %v444_v12 }
  0x31   :  { %v281_v58 = vadd.f32 %v280_v48, %v279_v52  ;;  %v73_v63 = vmul.f32 %v322_v20, %v71_v57  ;;  %v79_v1 = vmul.f32 %v77_v59, %v446_v13 }
  0x32   :  { %v88_v3 = vcombine.high %v72_v60, %v72_v60  ;;  %v95_v4 = vrot.slane %v72_v60, %v442_v11  ;;  %v80_v5 = vmul.f32 %v78_v62, %v444_v12 }
  0x33   :  { %282 = vadd.xlane.f32.xlu1 %v281_v58  ;;  %v105_v9 = vcombine.high %v73_v63, %v73_v63  ;;  %v112_v7 = vrot.slane %v73_v63, %v442_v11  ;;  %v81_v10 = vmul.f32 %v79_v1, %v446_v13 }
  0x34   :  { %v102_v15 = vrot.slane %v88_v3, %v442_v11  ;;  %v103_v16 = vcombine.high %v95_v4, %v95_v4  ;;  %v131_v17 = vsel %vm130_vm2, %v95_v4, 0.0  ;;  %v82_v18 = vmul.f32 %v80_v5, %v60_v61 }
  0x35   :  { %v83_v20 = vmul.f32 %v81_v10, %v61_v0  ;;  %v119_v23 = vrot.slane %v105_v9, %v442_v11  ;;  %v120_v24 = vcombine.high %v112_v7, %v112_v7  ;;  %v138_v14 = vsel %vm130_vm2, %v112_v7, 0.0 }
  0x36   :  { %v104_v21 = vcombine.high %v102_v15, %v102_v15  ;;  %v132_v8 = vsel %vm130_vm2, %v103_v16, 0.0  ;;  %v134_v12 = vsel %vm130_vm2, %v102_v15, 0.0  ;;  %v84_v22 = vmul.f32 %v323_v6, %v82_v18 }
  0x37   :  { %v133_v25 = vadd.f32 %v132_v8, %v131_v17  ;;  %v85_v26 = vmul.f32 %v324_v19, %v83_v20  ;;  %v121_v36 = vcombine.high %v119_v23, %v119_v23  ;;  %v140_v37 = vsel %vm130_vm2, %v120_v24, 0.0 }
  0x38   :  { %v136_v13 = vsel %vm130_vm2, %v104_v21, 0.0  ;;  %v157_v27 = vcombine.high %v84_v22, %v84_v22  ;;  %v164_v28 = vrot.slane %v84_v22, %v442_v11  ;;  %v142_v43 = vsel %vm130_vm2, %v119_v23, 0.0 }
  0x39   :  { %v135_v29 = vadd.f32 %v134_v12, %v133_v25  ;;  %v174_v32 = vcombine.high %v85_v26, %v85_v26  ;;  %v181_v33 = vrot.slane %v85_v26, %v442_v11  ;;  %v144_v49 = vsel %vm130_vm2, %v121_v36, 0.0 }
  0x3a   :  { %v171_v30 = vrot.slane %v157_v27, %v442_v11  ;;  %v172_v31 = vcombine.high %v164_v28, %v164_v28  ;;  %v199_v35 = vsel %vm130_vm2, %v164_v28, 0.0  ;;  %v292_v22 = vand.u32 127, %v92_v2 }
  0x3b   :  { %v137_v34 = vadd.f32 %v136_v13, %v135_v29  ;;  %v188_v44 = vrot.slane %v174_v32, %v442_v11  ;;  %v189_v45 = vcombine.high %v181_v33, %v181_v33  ;;  %v206_v50 = vsel %vm130_vm2, %v181_v33, 0.0 }
  0x3c   :  { %v173_v38 = vcombine.high %v171_v30, %v171_v30  ;;  %v200_v39 = vsel %vm130_vm2, %v172_v31, 0.0  ;;  %v202_v42 = vsel %vm130_vm2, %v171_v30, 0.0  ;;  %vm293_vm5 = vcmp.eq.s32.totalorder %v292_v22, 0 }
  0x3d   :  { %v139_v40 = vadd.f32 %v138_v14, %v137_v34  ;;  %v201_v41 = vadd.f32 %v200_v39, %v199_v35  ;;  %v190_v53 = vcombine.high %v188_v44, %v188_v44  ;;  %v208_v54 = vsel %vm130_vm2, %v189_v45, 0.0 }
  0x3e   :  { %v204_v46 = vsel %vm130_vm2, %v173_v38, 0.0  ;;  %v210_v57 = vsel %vm130_vm2, %v188_v44, 0.0  ;;  %vm296_vm6 = vcmp.eq.s32.totalorder %v292_v22, 1  ;;  %vm300_vm7 = vcmp.eq.s32.totalorder %v292_v22, 2 }
  0x3f   :  { %v141_v47 = vadd.f32 %v140_v37, %v139_v40  ;;  %v203_v48 = vadd.f32 %v202_v42, %v201_v41  ;;  %v212_v58 = vsel %vm130_vm2, %v190_v53, 0.0 }
  0x41   :  { %v143_v51 = vadd.f32 %v142_v43, %v141_v47  ;;  %v205_v52 = vadd.f32 %v204_v46, %v203_v48 }
  0x43   :  { %v145_v55 = vadd.f32 %v144_v49, %v143_v51  ;;  %v207_v56 = vadd.f32 %v206_v50, %v205_v52 }
  0x45   :  { %146 = vadd.xlane.f32.xlu0 %v145_v55  ;;  %v209_v11 = vadd.f32 %v208_v54, %v207_v56 }
  0x47   :  { %v211_v59 = vadd.f32 %v210_v57, %v209_v11 }
  0x49   :  { %v213_v60 = vadd.f32 %v212_v58, %v211_v59 }
  0x4b   :  { %214 = vadd.xlane.f32.xlu0 %v213_v60 }
  0xbc   :  { %v283_v61 = vpop.xlane.xlu1 %282 }
  0xbd   :  { %v284_v62 = vrot.slane %v283_v61, 4 }
  0xbf   :  { %v285_v1 = vadd.f32 %v284_v62, %v283_v61 }
  0xc1   :  { %v286_v5 = vrot.slane %v285_v1, 2 }
  0xc3   :  { %v287_v16 = vadd.f32 %v286_v5, %v285_v1 }
  0xc5   :  { %v288_v20 = vrot.slane %v287_v16, 1 }
  0xc7   :  { %v289_v12 = vadd.f32 %v288_v20, %v287_v16 }
  0xce   :  { %v147_v63 = vpop.xlane.xlu0 %146 }
  0xcf   :  { %v148_v0 = vrot.slane %v147_v63, 4 }
  0xd1   :  { %v149_v3 = vadd.f32 %v148_v0, %v147_v63 }
  0xd3   :  { %v150_v4 = vrot.slane %v149_v3, 2 }
  0xd4   :  { %v215_v6 = vpop.xlane.xlu0 %214 }
  0xd5   :  { %v216_v9 = vrot.slane %v215_v6, 4  ;;  %v151_v7 = vadd.f32 %v150_v4, %v149_v3 }
  0xd7   :  { %v217_v10 = vadd.f32 %v216_v9, %v215_v6  ;;  %v152_v15 = vrot.slane %v151_v7, 1 }
  0xd9   :  { %v218_v17 = vrot.slane %v217_v10, 2  ;;  %v153_v18 = vadd.f32 %v152_v15, %v151_v7 }
  0xdb   :  { %v219_v19 = vadd.f32 %v218_v17, %v217_v10  ;;  %325 = vpush %v153_v18 }
  0xdd   :  { %v220_v21 = vrot.slane %v219_v19, 1 }
  0xdf   :  { %v221_v8 = vadd.f32 %v220_v21, %v219_v19 }
  0xe1   :  { %327 = vpush %v221_v8 }
  0xe2   :  { %329 = vpush %v289_v12 }
 0x10c   :  { %s326_s0 = spop %325 }
 0x10d   :  { %v294_v23 = vstv %s326_s0 }
 0x10e   :  { %v295_v25 = vsel %vm293_vm5, %v294_v23, 0.0 }
 0x112   :  { %s328_s1 = spop %327 }
 0x113   :  { %v297_v24 = vstv %s328_s1  ;;  %s330_s19 = spop %329 }
 0x114   :  { %v298_v13 = vsel %vm296_vm6, %v297_v24, 0.0  ;;  %v301_v26 = vstv %s330_s19 }
 0x115   :  { %v299_v27 = vadd.f32 %v298_v13, %v295_v25  ;;  %v302_v28 = vsel %vm300_vm7, %v301_v26, 0.0 }
 0x117   :  { %v303_v29 = vadd.f32 %v302_v28, %v299_v27 }
 0x119   :  { %304 = vst [vmem:[#allocation7] sm:$0x1] %v303_v29 }
 0x11a   :  { %395 = shalt.err (!%p392_p0)
}
 0x11b   :  { %314 = dma.vmem_to_hbm [thread:$0]  %s312_s21, 16, %s507_s2, [#allocation4]  }
 0x11c   :  { %408 = dma.done.wait [#allocation4], 16  }
 0x11d   :  { %409 = vsyncadd [#allocation4], 4294967280 }
 0x11e   :  { %318 = vsyncpa [#allocation3], 1 }
 0x11f   :  { %319 = vsyncpa [#allocation6], 1 }
 0x120   :  { %320 = vsyncpa [#allocation4], 1 }

</bundles_post_ra>
